<compile_context>
chip_gen: v7x
topology: tpu7x:2x2x1
jax: 0.10.0
libtpu: 0.0.40
codegen_flags: <defaults>
</compile_context>

<pallas_src>
import jax
import jax.numpy as jnp
from jax.experimental import pallas as pl
from jax.experimental.pallas import tpu as pltpu


_LN_EPS = 1e-5


def _vmem_budget_bytes():
    """Generation-aware scoped-VMEM budget, leaving headroom for compiler scratch."""
    try:
        phys = int(pltpu.get_tpu_info().vmem_capacity_bytes)
    except Exception:
        phys = 64 * 1024 * 1024                    # conservative (v7x per-TC VMEM)
    if phys <= 64 * 1024 * 1024:
        return 48 * 1024 * 1024                    # v7x: 64 MiB physical -> keep headroom
    return 100 * 1024 * 1024                       # v5e / v6e: 128 MiB physical


# ---------------------------------------------------------------------------
# Fused-gather kernel: 2x2 merge (single contiguous slab) + LayerNorm(4C) + Linear.
# ---------------------------------------------------------------------------
def _fused_merge_kernel(x_ref, we_ref, wo_ref, b_ref, o_ref):
    """x_ref:  (tb, 2, W2, 2C) — [:,0] = even-H rows [x0|x2], [:,1] = odd-H rows [x1|x3].
    we_ref/wo_ref: (2C, 2C_out) gamma-folded weight halves (bf16, resident).
    b_ref:   (1, 2C_out) beta-folded output bias (f32).
    o_ref:   (tb*W2, 2C_out).
    """
    tb, _, w2, c2 = x_ref.shape
    m = tb * w2
    inv_n = 1.0 / float(2 * c2)   # 1 / (4C)

    x = x_ref[...].astype(jnp.float32)              # (tb, 2, w2, c2)
    # Leading-dim slices (no (8,128) tile crossing) + tile-aligned collapse
    # (caller guarantees w2 % 8 == 0, c2 % 128 == 0).
    xe = x[:, 0].reshape(m, c2)                     # [x0 | x2]
    xo = x[:, 1].reshape(m, c2)                     # [x1 | x3]

    # Two-pass (centered) LayerNorm statistics over the full 4C channels.
    mean = (jnp.sum(xe, axis=-1, keepdims=True)
            + jnp.sum(xo, axis=-1, keepdims=True)) * inv_n
    de = xe - mean
    do = xo - mean
    var = (jnp.sum(de * de, axis=-1, keepdims=True)
           + jnp.sum(do * do, axis=-1, keepdims=True)) * inv_n
    inv = jax.lax.rsqrt(var + _LN_EPS)

    ne = (de * inv).astype(we_ref.dtype)
    no = (do * inv).astype(wo_ref.dtype)

    acc = jnp.dot(ne, we_ref[...], preferred_element_type=jnp.float32)
    acc = acc + jnp.dot(no, wo_ref[...], preferred_element_type=jnp.float32)
    acc = acc + b_ref[...].astype(jnp.float32)
    o_ref[...] = acc.astype(o_ref.dtype)


def _fused_merge_call(xr, we, wo, bias, out_dtype):
    bdh2, _, w2, c2 = xr.shape
    c_out = we.shape[1]
    in_item = xr.dtype.itemsize
    out_item = jnp.dtype(out_dtype).itemsize

    budget = _vmem_budget_bytes()
    # Resident weights / bias (BlockSpec inputs are double-buffered).
    w_bytes = 2 * (2 * c2 * c_out * we.dtype.itemsize + c_out * 4)
    # Per H-pair-row VMEM footprint: double-buffered input slab + output slab
    # + in-kernel f32 temporaries (x copy, centered copies, products, acc, ...).
    per_pair = 2 * (2 * w2 * c2 * in_item)
    per_pair += 2 * (w2 * c_out * out_item)
    per_pair += w2 * (8 * c2 + 3 * c_out) * 4
    avail = max(budget - w_bytes, per_pair)
    tb = max(1, min(bdh2, int(avail // per_pair)))
    # Prefer >= 4 grid steps so v7x megacore gets balanced, pipelined work.
    if bdh2 >= 4:
        tb = min(tb, pl.cdiv(bdh2, 4))
    grid = (pl.cdiv(bdh2, tb),)           # boundary blocks masked by Pallas
    n = bdh2 * w2

    return pl.pallas_call(
        _fused_merge_kernel,
        out_shape=jax.ShapeDtypeStruct((n, c_out), out_dtype),
        grid_spec=pltpu.PrefetchScalarGridSpec(
            num_scalar_prefetch=0,
            grid=grid,
            in_specs=[
                pl.BlockSpec((tb, 2, w2, c2), lambda i: (i, 0, 0, 0)),  # one contiguous slab
                pl.BlockSpec((c2, c_out), lambda i: (0, 0)),            # We (resident)
                pl.BlockSpec((c2, c_out), lambda i: (0, 0)),            # Wo (resident)
                pl.BlockSpec((1, c_out), lambda i: (0, 0)),             # bias
            ],
            out_specs=pl.BlockSpec((tb * w2, c_out), lambda i: (i, 0)),
        ),
        compiler_params=pltpu.CompilerParams(
            dimension_semantics=("parallel",),
            vmem_limit_bytes=int(budget),
        ),
    )(xr, we, wo, bias)


# ---------------------------------------------------------------------------
# General (unfused gather) kernel: LayerNorm(4C) + Linear(4C -> 2C).
# ---------------------------------------------------------------------------
def _norm_reduce_kernel(x_ref, w_ref, b_ref, o_ref):
    """x_ref: (tm, 4C); w_ref: (4C, 2C_out) gamma-folded bf16; b_ref: (1, 2C_out)."""
    x = x_ref[...].astype(jnp.float32)
    mean = jnp.mean(x, axis=-1, keepdims=True)
    xc = x - mean
    var = jnp.mean(xc * xc, axis=-1, keepdims=True)
    inv = jax.lax.rsqrt(var + _LN_EPS)
    y = (xc * inv).astype(w_ref.dtype)
    acc = jnp.dot(y, w_ref[...], preferred_element_type=jnp.float32)
    o_ref[...] = (acc + b_ref[...].astype(jnp.float32)).astype(o_ref.dtype)


def _norm_reduce_call(xm, wg, bias, out_dtype):
    n, c4 = xm.shape
    c_out = wg.shape[1]
    in_item = xm.dtype.itemsize
    out_item = jnp.dtype(out_dtype).itemsize

    budget = _vmem_budget_bytes()
    w_bytes = 2 * (c4 * c_out * wg.dtype.itemsize + c_out * 4)
    per_row = 2 * c4 * in_item + 2 * c_out * out_item + (4 * c4 + 2 * c_out) * 4
    avail = max(budget - w_bytes, 8 * per_row)
    tm = int(avail // per_row)
    if tm >= n:
        tm = n                             # single full block (always a legal shape)
    else:
        tm = max(8, (tm // 8) * 8)         # tiled rows must be a multiple of 8
    grid = (pl.cdiv(n, tm),)               # no row padding; boundary block is masked

    return pl.pallas_call(
        _norm_reduce_kernel,
        out_shape=jax.ShapeDtypeStruct((n, c_out), out_dtype),
        grid_spec=pltpu.PrefetchScalarGridSpec(
            num_scalar_prefetch=0,
            grid=grid,
            in_specs=[
                pl.BlockSpec((tm, c4), lambda i: (i, 0)),
                pl.BlockSpec((c4, c_out), lambda i: (0, 0)),
                pl.BlockSpec((1, c_out), lambda i: (0, 0)),
            ],
            out_specs=pl.BlockSpec((tm, c_out), lambda i: (i, 0)),
        ),
        compiler_params=pltpu.CompilerParams(
            dimension_semantics=("parallel",),
            vmem_limit_bytes=int(budget),
        ),
    )(xm, wg, bias)


# ---------------------------------------------------------------------------
# Forward wrapper (mirrors the PyTorch PatchMerging module).
# ---------------------------------------------------------------------------
def patch_merging_forward(x, gamma, beta, weight):
    """PatchMerging forward.

    Args:
      x:      (B, D, H, W, C) input feature.
      gamma:  (4C,) LayerNorm weight.
      beta:   (4C,) LayerNorm bias.
      weight: (2C, 4C) reduction weight (PyTorch nn.Linear, bias-free).
    Returns:
      (B, D, ceil(H/2), ceil(W/2), 2C)
    """
    b, d, h, w, c = x.shape
    if (h % 2) or (w % 2):   # same semantics as F.pad in the reference
        x = jnp.pad(x, ((0, 0), (0, 0), (0, h % 2), (0, w % 2), (0, 0)))
        h, w = x.shape[2], x.shape[3]
    h2, w2 = h // 2, w // 2
    c2, c_out = 2 * c, 2 * c
    out_dtype = x.dtype

    # Fold the LayerNorm affine into the reduction weight / an output bias:
    #   LN(x) @ W^T = ((x - mu) * inv) @ (gamma[:, None] * W^T) + beta @ W^T
    w_t = weight.T.astype(jnp.float32)                 # (4C, 2C)
    wg = gamma.astype(jnp.float32)[:, None] * w_t      # (4C, 2C)
    bias = (beta.astype(jnp.float32) @ w_t).reshape(1, c_out)

    if (w2 % 8 == 0) and (c2 % 128 == 0):
        # Fused 2x2 gather: free view reshape; parities are split inside the kernel.
        #   row layout at parity 0 = [x0 | x2], parity 1 = [x1 | x3]
        xr = x.reshape(b * d * h2, 2, w2, c2)
        # NOTE: weights are intentionally bf16 for the MXU (f32 accumulation).
        we = jnp.concatenate([wg[0:c], wg[2 * c:3 * c]], axis=0).astype(jnp.bfloat16)
        wo = jnp.concatenate([wg[c:2 * c], wg[3 * c:4 * c]], axis=0).astype(jnp.bfloat16)
        out2d = _fused_merge_call(xr, we, wo, bias, out_dtype)
    else:
        # TODO(synk): when W/2 is not a multiple of 8 or 2C is not lane-aligned,
        # the in-kernel (tb, W/2, 2C) -> (tb*W/2, 2C) collapse is not tile
        # aligned, so the 2x2 gather is left to XLA here (one extra HBM pass)
        # before the fused LayerNorm+matmul kernel.
        x0 = x[:, :, 0::2, 0::2, :]
        x1 = x[:, :, 1::2, 0::2, :]
        x2 = x[:, :, 0::2, 1::2, :]
        x3 = x[:, :, 1::2, 1::2, :]
        xm = jnp.concatenate([x0, x1, x2, x3], axis=-1)
        xm = xm.reshape(b * d * h2 * w2, 4 * c)
        out2d = _norm_reduce_call(xm, wg.astype(jnp.bfloat16), bias, out_dtype)

    return out2d.reshape(b, d, h2, w2, c_out)


def _reference(x, gamma, beta, weight):
    """Plain-JAX f32 reference (mirrors the PyTorch module)."""
    _, _, h, w, _ = x.shape
    if (h % 2) or (w % 2):
        x = jnp.pad(x, ((0, 0), (0, 0), (0, h % 2), (0, w % 2), (0, 0)))
    x0 = x[:, :, 0::2, 0::2, :]
    x1 = x[:, :, 1::2, 0::2, :]
    x2 = x[:, :, 0::2, 1::2, :]
    x3 = x[:, :, 1::2, 1::2, :]
    xm = jnp.concatenate([x0, x1, x2, x3], axis=-1).astype(jnp.float32)
    mean = jnp.mean(xm, axis=-1, keepdims=True)
    var = jnp.mean((xm - mean) ** 2, axis=-1, keepdims=True)
    xn = (xm - mean) * jax.lax.rsqrt(var + _LN_EPS)
    xn = xn * gamma + beta
    return jnp.einsum("...i,oi->...o", xn, weight)


if __name__ == "__main__":
    key = jax.random.PRNGKey(0)
    k_x, k_w, k_g, k_b, k_x2, k_x3 = jax.random.split(key, 6)

    # Test 1: fused-gather path (W/2 multiple of 8, 2C multiple of 128).
    B, D, H, W, C = 2, 2, 16, 16, 64
    x = jax.random.normal(k_x, (B, D, H, W, C), dtype=jnp.float32)
    weight = jax.random.normal(k_w, (2 * C, 4 * C), dtype=jnp.float32) * 0.05
    gamma = 1.0 + 0.1 * jax.random.normal(k_g, (4 * C,), dtype=jnp.float32)
    beta = 0.1 * jax.random.normal(k_b, (4 * C,), dtype=jnp.float32)

    out = jax.block_until_ready(patch_merging_forward(x, gamma, beta, weight))
    ref = _reference(x, gamma, beta, weight)
    assert out.shape == (B, D, H // 2, W // 2, 2 * C), out.shape
    err = float(jnp.max(jnp.abs(out - ref)))
    assert err < 5e-2, err   # bf16 MXU weights -> loosened tolerance

    # Test 2: fused path with a partial boundary block (B*D*H/2 not divisible
    # by the row tile) -> exercises cdiv-grid masking.
    x3 = jax.random.normal(k_x3, (1, 3, 10, 16, C), dtype=jnp.float32)
    out3 = jax.block_until_ready(patch_merging_forward(x3, gamma, beta, weight))
    ref3 = _reference(x3, gamma, beta, weight)
    assert out3.shape == (1, 3, 5, 8, 2 * C), out3.shape
    err3 = float(jnp.max(jnp.abs(out3 - ref3)))
    assert err3 < 5e-2, err3

    # Test 3: odd spatial dims (F.pad semantics) -> general fallback path.
    B2, D2, H2, W2, C2 = 2, 2, 7, 7, 32
    x_odd = jax.random.normal(k_x2, (B2, D2, H2, W2, C2), dtype=jnp.float32)
    w_odd = jax.random.normal(k_w, (2 * C2, 4 * C2), dtype=jnp.float32) * 0.05
    g_odd = 1.0 + 0.1 * jax.random.normal(k_g, (4 * C2,), dtype=jnp.float32)
    b_odd = 0.1 * jax.random.normal(k_b, (4 * C2,), dtype=jnp.float32)

    out2 = jax.block_until_ready(patch_merging_forward(x_odd, g_odd, b_odd, w_odd))
    ref2 = _reference(x_odd, g_odd, b_odd, w_odd)
    assert out2.shape == (B2, D2, 4, 4, 2 * C2), out2.shape
    err2 = float(jnp.max(jnp.abs(out2 - ref2)))
    assert err2 < 5e-2, err2

    print("KERNEL_OK")
</pallas_src>

<mosaic_0001>
module attributes {stable_mosaic.version = 11 : i64} {
  func.func @_fused_merge_kernel(%arg0: i32, %arg1: memref<8x2x8x128xf32, #tpu.memory_space<vmem>>, %arg2: memref<128x128xbf16, #tpu.memory_space<vmem>>, %arg3: memref<128x128xbf16, #tpu.memory_space<vmem>>, %arg4: memref<1x128xf32, #tpu.memory_space<vmem>>, %arg5: memref<64x128xf32, #tpu.memory_space<vmem>>) attributes {dimension_semantics = [#tpu.dimension_semantics<parallel>], iteration_bounds = array<i64: 4>, scalar_prefetch = 0 : i64, scratch_operands = 0 : i64, tpu.core_type = #tpu.core_type<tc>, window_params = [{transform_indices = @transform_0, window_bounds = array<i64: 8, 2, 8, 128>}, {pipeline_mode = #tpu.pipeline_mode<synchronous>, transform_indices = @transform_1, window_bounds = array<i64: 128, 128>}, {pipeline_mode = #tpu.pipeline_mode<synchronous>, transform_indices = @transform_2, window_bounds = array<i64: 128, 128>}, {pipeline_mode = #tpu.pipeline_mode<synchronous>, transform_indices = @transform_3, window_bounds = array<i64: 1, 128>}, {transform_indices = @transform_4, window_bounds = array<i64: 64, 128>}]} {
    %c0 = arith.constant 0 : index
    %c0_0 = arith.constant 0 : index
    %c0_1 = arith.constant 0 : index
    %c0_2 = arith.constant 0 : index
    %0 = vector.load %arg1[%c0, %c0_0, %c0_1, %c0_2] : memref<8x2x8x128xf32, #tpu.memory_space<vmem>>, vector<8x2x8x128xf32>
    %1 = vector.extract_strided_slice %0 {offsets = [0, 0, 0, 0], sizes = [8, 1, 8, 128], strides = [1, 1, 1, 1]} : vector<8x2x8x128xf32> to vector<8x1x8x128xf32>
    %2 = vector.shape_cast %1 : vector<8x1x8x128xf32> to vector<8x8x128xf32>
    %3 = vector.shape_cast %2 : vector<8x8x128xf32> to vector<64x128xf32>
    %4 = vector.extract_strided_slice %0 {offsets = [0, 1, 0, 0], sizes = [8, 1, 8, 128], strides = [1, 1, 1, 1]} : vector<8x2x8x128xf32> to vector<8x1x8x128xf32>
    %5 = vector.shape_cast %4 : vector<8x1x8x128xf32> to vector<8x8x128xf32>
    %6 = vector.shape_cast %5 : vector<8x8x128xf32> to vector<64x128xf32>
    %cst = arith.constant dense<0.000000e+00> : vector<64xf32>
    %7 = vector.multi_reduction <add>, %3, %cst [1] : vector<64x128xf32> to vector<64xf32>
    %8 = vector.shape_cast %7 : vector<64xf32> to vector<64x1xf32>
    %cst_3 = arith.constant dense<0.000000e+00> : vector<64xf32>
    %9 = vector.multi_reduction <add>, %6, %cst_3 [1] : vector<64x128xf32> to vector<64xf32>
    %10 = vector.shape_cast %9 : vector<64xf32> to vector<64x1xf32>
    %11 = arith.addf %8, %10 : vector<64x1xf32>
    %cst_4 = arith.constant 3.906250e-03 : f32
    %12 = vector.broadcast %cst_4 : f32 to vector<64x1xf32>
    %13 = arith.mulf %11, %12 : vector<64x1xf32>
    %14 = vector.broadcast %13 : vector<64x1xf32> to vector<64x128xf32>
    %15 = arith.subf %3, %14 : vector<64x128xf32>
    %16 = vector.broadcast %13 : vector<64x1xf32> to vector<64x128xf32>
    %17 = arith.subf %6, %16 : vector<64x128xf32>
    %18 = arith.mulf %15, %15 : vector<64x128xf32>
    %cst_5 = arith.constant dense<0.000000e+00> : vector<64xf32>
    %19 = vector.multi_reduction <add>, %18, %cst_5 [1] : vector<64x128xf32> to vector<64xf32>
    %20 = vector.shape_cast %19 : vector<64xf32> to vector<64x1xf32>
    %21 = arith.mulf %17, %17 : vector<64x128xf32>
    %cst_6 = arith.constant dense<0.000000e+00> : vector<64xf32>
    %22 = vector.multi_reduction <add>, %21, %cst_6 [1] : vector<64x128xf32> to vector<64xf32>
    %23 = vector.shape_cast %22 : vector<64xf32> to vector<64x1xf32>
    %24 = arith.addf %20, %23 : vector<64x1xf32>
    %cst_7 = arith.constant 3.906250e-03 : f32
    %25 = vector.broadcast %cst_7 : f32 to vector<64x1xf32>
    %26 = arith.mulf %24, %25 : vector<64x1xf32>
    %cst_8 = arith.constant 9.99999974E-6 : f32
    %27 = vector.broadcast %cst_8 : f32 to vector<64x1xf32>
    %28 = arith.addf %26, %27 : vector<64x1xf32>
    %29 = math.rsqrt %28 : vector<64x1xf32>
    %30 = vector.broadcast %29 : vector<64x1xf32> to vector<64x128xf32>
    %31 = arith.mulf %15, %30 : vector<64x128xf32>
    %32 = arith.truncf %31 : vector<64x128xf32> to vector<64x128xbf16>
    %33 = vector.broadcast %29 : vector<64x1xf32> to vector<64x128xf32>
    %34 = arith.mulf %17, %33 : vector<64x128xf32>
    %35 = arith.truncf %34 : vector<64x128xf32> to vector<64x128xbf16>
    %c0_9 = arith.constant 0 : index
    %c0_10 = arith.constant 0 : index
    %36 = vector.load %arg2[%c0_9, %c0_10] : memref<128x128xbf16, #tpu.memory_space<vmem>>, vector<128x128xbf16>
    %cst_11 = arith.constant dense<0.000000e+00> : vector<64x128xf32>
    %37 = tpu.matmul %32, %36, %cst_11 {dimension_numbers = #tpu.dot_dimension_numbers<[1], [0], [0], [1], [0, 0, 1, 1], [], []>} : vector<64x128xbf16>, vector<128x128xbf16>, vector<64x128xf32> -> vector<64x128xf32>
    %c0_12 = arith.constant 0 : index
    %c0_13 = arith.constant 0 : index
    %38 = vector.load %arg3[%c0_12, %c0_13] : memref<128x128xbf16, #tpu.memory_space<vmem>>, vector<128x128xbf16>
    %cst_14 = arith.constant dense<0.000000e+00> : vector<64x128xf32>
    %39 = tpu.matmul %35, %38, %cst_14 {dimension_numbers = #tpu.dot_dimension_numbers<[1], [0], [0], [1], [0, 0, 1, 1], [], []>} : vector<64x128xbf16>, vector<128x128xbf16>, vector<64x128xf32> -> vector<64x128xf32>
    %40 = arith.addf %37, %39 : vector<64x128xf32>
    %c0_15 = arith.constant 0 : index
    %c0_16 = arith.constant 0 : index
    %41 = vector.load %arg4[%c0_15, %c0_16] : memref<1x128xf32, #tpu.memory_space<vmem>>, vector<1x128xf32>
    %42 = vector.broadcast %41 : vector<1x128xf32> to vector<64x128xf32>
    %43 = arith.addf %40, %42 : vector<64x128xf32>
    %c0_17 = arith.constant 0 : index
    %c0_18 = arith.constant 0 : index
    %44 = vector.load %arg5[%c0_17, %c0_18] : memref<64x128xf32, #tpu.memory_space<vmem>>, vector<64x128xf32>
    tpu.vector_store %arg5[%c0_17, %c0_18], %43 {strides = array<i32>} : memref<64x128xf32, #tpu.memory_space<vmem>>, vector<64x128xf32>,
    return
  }
  func.func @transform_0(%arg0: i32) -> (i32, i32, i32, i32) {
    %c0_i32 = arith.constant 0 : i32
    %c0_i32_0 = arith.constant 0 : i32
    %c0_i32_1 = arith.constant 0 : i32
    %c0_i32_2 = arith.constant 0 : i32
    return %arg0, %c0_i32, %c0_i32_0, %c0_i32_1 : i32, i32, i32, i32
  }
  func.func @transform_1(%arg0: i32) -> (i32, i32) {
    %c0_i32 = arith.constant 0 : i32
    %c0_i32_0 = arith.constant 0 : i32
    %c0_i32_1 = arith.constant 0 : i32
    return %c0_i32, %c0_i32_0 : i32, i32
  }
  func.func @transform_2(%arg0: i32) -> (i32, i32) {
    %c0_i32 = arith.constant 0 : i32
    %c0_i32_0 = arith.constant 0 : i32
    %c0_i32_1 = arith.constant 0 : i32
    return %c0_i32, %c0_i32_0 : i32, i32
  }
  func.func @transform_3(%arg0: i32) -> (i32, i32) {
    %c0_i32 = arith.constant 0 : i32
    %c0_i32_0 = arith.constant 0 : i32
    %c0_i32_1 = arith.constant 0 : i32
    return %c0_i32, %c0_i32_0 : i32, i32
  }
  func.func @transform_4(%arg0: i32) -> (i32, i32) {
    %c0_i32 = arith.constant 0 : i32
    %c0_i32_0 = arith.constant 0 : i32
    return %arg0, %c0_i32 : i32, i32
  }
}

</mosaic_0001>

<bundles_post_ra>
// kernel: tpu_custom_call.1
= control target key start
LH: loop header
LB: loop body
LE: loop exit
PB: predicated region body
PF: predicated region fallthrough
CT: control target
= control target key end

     0   :  { %9 = vsyncpa [#allocation3], 0  ;;  %s1596_s0 = inlined_call_operand.hbm [shape: f32[32,2,8,128], index: 0, kind: input, shape index: {}]   ;;  %s1597_s1 = inlined_call_operand.hbm [shape: bf16[128,128], index: 1, kind: input, shape index: {}]   ;;  %s1598_s2 = inlined_call_operand.hbm [shape: bf16[128,128], index: 2, kind: input, shape index: {}]   ;;  %s1599_s3 = inlined_call_operand.vmem [shape: f32[1,128], index: 3, kind: input, shape index: {}]   ;;  %s1600_s4 = inlined_call_operand.hbm [shape: f32[256,128], index: 4, kind: output, shape index: {}]  }
   0x1   :  { %11 = vsyncpa [#allocation3 + $0x1], 0 }
   0x2   :  { %12 = vsyncpa [#allocation6], 0 }
   0x3   :  { %13 = vsyncpa [#allocation4], 0 }
   0x4   :  { %15 = vsyncpa [#allocation4 + $0x1], 0  ;;  %s1237_s15 = smov 0   ;;  %s1239_s16 = smov 0  }
   0x5   :  { %s1241_s17 = smov 0   ;;  %s1243_s18 = smov 0  }
   0x6 LB: > { %s1258_s19 = sadd.s32 4294967295, %s1200_s18   ;;  %s820_s20 = sadd.s32 4294967294, %s1200_s18   ;;  %s1200_s18 = sphi %s1243_s18, %s1619_s18   ;;  %s1196_s17 = sphi %s1241_s17, %s1618_s17   ;;  %s1192_s16 = sphi %s1239_s16, %s1617_s16   ;;  %s1188_s15 = sphi %s1237_s15, %s1616_s15  }
   0x7   : > { %p41_p0 = scmp.ne.s32.totalorder %s1192_s16, %s1188_s15  ;;  %p1601_p1 = scmp.eq.s32.totalorder %s1258_s19, 0 }
   0x8   : > { %p134_p3 = scmp.eq.s32.totalorder %s820_s20, 3  ;;  %p821_p5 = scmp.ge.s32.totalorder %s1200_s18, 1 }
   0x9   : > { %p1267_p4 = por %p1601_p1, %p41_p0  ;;  %p141_p7 = scmp.lt.s32.totalorder %s1200_s18, 5 }
   0xa   : > { %p1272_p6 = por %p134_p3, %p41_p0  ;;  %s1202_s24 = smov [#allocation5]  }
   0xb   : > { %s1604_s21 = scalar_select %p1267_p4, 1, 0 }
   0xc   : > { %s1605_s22 = scalar_select %p1272_p6, 1, 0 }
   0xd   : > { %p1277_p8 = pnand %p821_p5, %p141_p7  ;;  %s153_s25 = sshll.u32 %s1202_s24, 4  ;;  %s154_s25 = int_to_ptr.vmem [resolvable:$true] %s153_s25 }
   0xe   : > { %s1203_s27 = smov [#allocation7]   ;;  %s1044_s5 = scalar_lea.hbm %s1597_s1, 1024 }
   0xf   : > { %s1606_s23 = scalar_select %p1277_p8, 1, 0 }
  0x10   : > { %p951_p9 = pneg %p1277_p8  ;;  %s166_s28 = sshll.u32 %s1203_s27, 4  ;;  %s1289_s28 = int_to_ptr.vmem [resolvable:$true] %s166_s28 }
  0x11   : > { %p1045_p11 = scmp.ne.s32.totalorder %s1597_s1, %s1044_s5  ;;  %p1051_p3 = scmp.lt.u32.totalorder %s1044_s5, %s1597_s1 }
  0x12   : > { %p1285_p10 = pnand %p951_p9, %p1601_p1 }
  0x14   : > { %p1046_p12 = pneg %p1285_p10 }
  0x16   : > { %p1047_p13 = pnand %p1046_p12, %p1045_p11 }
  0x18   : > { %p1048_p0 = pneg %p1047_p13 }
  0x1a   : > { %p1053_p5 = pnand %p1051_p3, %p1048_p0 }
  0x1c   : > { %1056 = shalt.err (!%p1053_p5)
}
  0x1d   : > { %s1057_s10 = scalar_lea.vmem %s154_s25, 1024  ;;  %p1065_p2 = scmp.lt.s32.totalorder %s154_s25, %s154_s25 }
  0x1e   : > { %p1058_p7 = scmp.ne.s32.totalorder %s154_s25, %s1057_s10  ;;  %p1066_p6 = scmp.lt.s32.totalorder %s1057_s10, %s1057_s10 }
  0x20   : > { %p1060_p9 = pnand %p1058_p7, %p1046_p12  ;;  %p1067_p4 = por %p1066_p6, %p1065_p2 }
  0x22   : > { %p1061_p1 = pneg %p1060_p9 }
  0x24   : > { %p1068_p8 = pnand %p1067_p4, %p1061_p1 }
  0x26   : > { %1071 = shalt.err (!%p1068_p8)
}
  0x27   : > { %s1204_s11 = smov 64   ;;  %s1205_s12 = smov 4  }
  0x28   : > { %954 = dma.hbm_to_vmem [thread:$0]  (!%p1285_p10), %s1597_s1, 1024, %s154_s25, [#allocation6], %s1204_s11, %s1204_s11, %s1205_s12  }
  0x29   : > { %s1072_s27 = scalar_lea.hbm %s1598_s2, 1024 }
  0x2a   : > { %p1073_p11 = scmp.ne.s32.totalorder %s1598_s2, %s1072_s27  ;;  %p1079_p4 = scmp.lt.u32.totalorder %s1072_s27, %s1598_s2 }
  0x2c   : > { %p1075_p1 = pnand %p1073_p11, %p1046_p12 }
  0x2e   : > { %p1076_p2 = pneg %p1075_p1 }
  0x30   : > { %p1081_p6 = pnand %p1079_p4, %p1076_p2 }
  0x32   : > { %1084 = shalt.err (!%p1081_p6)
}
  0x33   : > { %s1085_s25 = scalar_lea.vmem %s1289_s28, 1024  ;;  %p1093_p3 = scmp.lt.s32.totalorder %s1289_s28, %s1289_s28 }
  0x34   : > { %p1086_p8 = scmp.ne.s32.totalorder %s1289_s28, %s1085_s25  ;;  %p1094_p5 = scmp.lt.s32.totalorder %s1085_s25, %s1085_s25 }
  0x36   : > { %p1088_p13 = pnand %p1086_p8, %p1046_p12  ;;  %p1095_p7 = por %p1094_p5, %p1093_p3 }
  0x38   : > { %p1089_p0 = pneg %p1088_p13 }
  0x3a   : > { %p1096_p9 = pnand %p1095_p7, %p1089_p0 }
  0x3c   : > { %1099 = shalt.err (!%p1096_p9)
}
  0x3d   : > { %957 = dma.hbm_to_vmem [thread:$0]  (!%p1285_p10), %s1598_s2, 1024, %s1289_s28, [#allocation6], %s1204_s11, %s1204_s11, %s1205_s12  }
  0x3e   : > { %s1339_s9 = sadd.s32 1, %s1200_s18   ;;  %s28_s26 = sadd.s32 1, %s1196_s17 }
  0x3f   : > { %s25_s10 = ssub.s32 %s1200_s18, %s1339_s9  ;;  %p35_p12 = scmp.ne.s32.totalorder %s1196_s17, %s1192_s16 }
  0x40   : > { %p26_p11 = scmp.eq.s32.totalorder %s25_s10, 0  ;;  %p36_p1 = scmp.eq.s32.totalorder %s1200_s18, 0 }
  0x41   : > { %p1608_p2 = scmp.eq.s32.totalorder %s1258_s19, 3  ;;  %p968_p6 = scmp.lt.s32.totalorder %s1200_s18, 4 }
  0x42   : > { %s1355_s14 = scalar_select %p26_p11, %s1196_s17, %s28_s26  }
  0x43   : > { %p1349_p4 = por %p1608_p2, %p35_p12  ;;  %p37_p8 = por %p36_p1, %p35_p12 }
  0x44   : > { %s183_s20 = sand.u32 1, %s1196_s17   ;;  %s857_s28 = sshll.u32 %s1200_s18, 11 }
  0x45   : > { %s825_s24 = sshll.u32 %s183_s20, 7  ;;  %s1362_s27 = scalar_lea.hbm %s1596_s0, %s857_s28 }
  0x46   : > { %s187_s29 = scalar_lea.vmem [#allocation2], %s825_s24  ;;  %p1366_p10 = pnand %p968_p6, %p37_p8 }
  0x47   : > { %s195_s30 = sshll.u32 %s187_s29, 4  ;;  %s1370_s6 = scalar_lea.sflag [#allocation3], %s183_s20  ;;  %s1364_s30 = int_to_ptr.vmem [resolvable:$true] %s195_s30 }
  0x48   : > { %s1100_s25 = scalar_lea.hbm %s1362_s27, 2048  ;;  %p1102_p0 = pneg %p1366_p10 }
  0x49   : > { %p1101_p13 = scmp.ne.s32.totalorder %s1362_s27, %s1100_s25  ;;  %s1105_s26 = scalar_lea.hbm %s1596_s0, 8192 }
  0x4a   : > { %p1106_p7 = scmp.lt.u32.totalorder %s1362_s27, %s1596_s0  ;;  %p1107_p9 = scmp.lt.u32.totalorder %s1105_s26, %s1100_s25 }
  0x4b   : > { %p1103_p3 = pnand %p1102_p0, %p1101_p13  ;;  %p1109_p11 = scmp.lt.u32.totalorder %s1100_s25, %s1362_s27 }
  0x4c   : > { %p1108_p12 = por %p1107_p9, %p1106_p7 }
  0x4d   : > { %p1104_p5 = pneg %p1103_p3 }
  0x4e   : > { %p1110_p1 = por %p1109_p11, %p1108_p12 }
  0x50   : > { %p1111_p2 = pnand %p1110_p1, %p1104_p5 }
  0x52   : > { %1114 = shalt.err (!%p1111_p2)
}
  0x53   : > { %s1115_s20 = scalar_lea.vmem %s1364_s30, 2048  ;;  %s1206_s28 = smov [#allocation2]  }
  0x54   : > { %p1116_p6 = scmp.ne.s32.totalorder %s1364_s30, %s1115_s20  ;;  %s1120_s11 = sshll.u32 %s1206_s28, 4  ;;  %s1121_s11 = int_to_ptr.vmem [resolvable:$false] %s1120_s11 }
  0x55   : > { %s1122_s12 = scalar_lea.vmem %s1121_s11, 4096  ;;  %p1123_p3 = scmp.lt.s32.totalorder %s1364_s30, %s1121_s11 }
  0x56   : > { %p1118_p8 = pnand %p1116_p6, %p1102_p0  ;;  %p1124_p7 = scmp.lt.s32.totalorder %s1122_s12, %s1115_s20 }
  0x58   : > { %p1119_p13 = pneg %p1118_p8  ;;  %p1125_p9 = por %p1124_p7, %p1123_p3 }
  0x5a   : > { %p1126_p12 = pnand %p1125_p9, %p1119_p13 }
  0x5c   : > { %1129 = shalt.err (!%p1126_p12)
}
  0x5d   : > { %s1207_s29 = smov 128   ;;  %s1208_s25 = smov 8  }
  0x5e   : > { %961 = dma.hbm_to_vmem [thread:$0]  (!%p1366_p10), %s1362_s27, 2048, %s1364_s30, %s1370_s6, %s1207_s29, %s1207_s29, %s1208_s25  }
  0x5f   : > { %p1611_p0 = scmp.ne.s32.totalorder %s1606_s23, 0 }
  0x60   : > { %s1401_s7 = sand.u32 (!%p1611_p0), 1, %s1192_s16   ;;  %p1612_p5 = scmp.ne.s32.totalorder (!%p1611_p0), %s1604_s21, 0 }
  0x61   : > { %207 = sbr.rel (%p1611_p0) target bundleno = 689 (0x2b1), region = 36  ;;  %s830_s8 = sshll.u32 (!%p1611_p0), %s1401_s7, 7 }
  0x62   : > { %s210_s26 = scalar_lea.sflag (!%p1611_p0), [#allocation3], %s1401_s7  ;;  %s1405_s10 = scalar_lea.vmem (!%p1611_p0), [#allocation2], %s830_s8 }
  0x68   : > { %1175 = dma.done.wait (%p1612_p5), %s210_s26, 2048  }
  0x69   : > { %1177 = vsyncadd (%p1612_p5), %s210_s26, 4294965248  ;;  %p1613_p10 = scmp.eq.s32.totalorder %s1258_s19, 0 }
  0x6b   : > { %1179 = dma.done.wait (%p1613_p10), [#allocation6], 2048   ;;  %p1614_p11 = pmov %p1613_p10 }
  0x6c   : > { %v250_v0 = vld [vmem:[%s1405_s10 + $0x8] sm:$0xff]  ;;  %v249_v1 = vld [vmem:[%s1405_s10] sm:$0xff]  ;;  %v252_v2 = vld [vmem:[%s1405_s10 + $0x18] sm:$0xff]  ;;  %s833_s21 = sshll.u32 %s1401_s7, 6  ;;  %s858_s6 = sshll.u32 %s1258_s19, 10 }
  0x6d   : > { %1181 = vsyncadd (%p1614_p11), [#allocation6], 4294965248  ;;  %281 = vadd.xlane.f32.xlu1 %v250_v0  ;;  %265 = vadd.xlane.f32.xlu0 %v249_v1  ;;  %v251_v3 = vld [vmem:[%s1405_s10 + $0x10] sm:$0xff]  ;;  %v253_v5 = vld [vmem:[%s1405_s10 + $0x20] sm:$0xff]  ;;  %s245_s30 = scalar_lea.vmem [#allocation8], %s833_s21  ;;  %s1553_s28 = scalar_lea.hbm %s1600_s4, %s858_s6 }
  0x6e   : > { %v255_v4 = vld [vmem:[%s1405_s10 + $0x30] sm:$0xff]  ;;  %v256_v6 = vld [vmem:[%s1405_s10 + $0x38] sm:$0xff]  ;;  %v254_v7 = vld [vmem:[%s1405_s10 + $0x28] sm:$0xff]  ;;  %s728_s5 = sshll.u32 %s245_s30, 4  ;;  %s715_s19 = scalar_lea.sflag [#allocation4], %s1401_s7  ;;  %s1548_s5 = int_to_ptr.vmem [resolvable:$true] %s728_s5 }
  0x6f   : > { %v1424_v8 = vld [vmem:[%s1405_s10 + $0x50] sm:$0xff]  ;;  %v1427_v9 = vld [vmem:[%s1405_s10 + $0x40] sm:$0xff]  ;;  %v1432_v10 = vld [vmem:[%s1405_s10 + $0x58] sm:$0xff]  ;;  %s1130_s11 = scalar_lea.vmem %s1548_s5, 1024  ;;  %s1209_s12 = smov [#allocation8]  }
  0x70   : > { %v1435_v11 = vld [vmem:[%s1405_s10 + $0x48] sm:$0xff]  ;;  %v1440_v12 = vld [vmem:[%s1405_s10 + $0x70] sm:$0xff]  ;;  %v1443_v13 = vld [vmem:[%s1405_s10 + $0x60] sm:$0xff]  ;;  %p1131_p1 = scmp.ne.s32.totalorder %s1548_s5, %s1130_s11  ;;  %s1134_s29 = sshll.u32 %s1209_s12, 4  ;;  %s1135_s29 = int_to_ptr.vmem [resolvable:$false] %s1134_s29 }
  0x71   : > { %283 = vadd.xlane.f32.xlu1 %v252_v2  ;;  %267 = vadd.xlane.f32.xlu0 %v251_v3  ;;  %v1448_v14 = vld [vmem:[%s1405_s10 + $0x78] sm:$0xff]  ;;  %v1451_v15 = vld [vmem:[%s1405_s10 + $0x68] sm:$0xff]  ;;  %v1012_v63 = vld [vmem:[#allocation7] sm:$0xff]   ;;  %s1136_s25 = scalar_lea.vmem %s1135_s29, 2048  ;;  %p1137_p8 = scmp.lt.s32.totalorder %s1548_s5, %s1135_s29 }
  0x72   : > { %883 = vmatprep.subr.bf16.mxu1 %v1012_v63  ;;  %p1132_p2 = pnand %p1131_p1, %p1349_p4  ;;  %p1138_p13 = scmp.lt.s32.totalorder %s1136_s25, %s1130_s11 }
  0x73   : > { %884 = vmatpush3.bf16.msra.mxu1 %v1012_v63 }
  0x74   : > { %p1133_p6 = pneg %p1132_p2  ;;  %p1139_p3 = por %p1138_p13, %p1137_p8 }
  0x75   : > { %271 = vadd.xlane.f32.xlu1 %v255_v4  ;;  %269 = vadd.xlane.f32.xlu0 %v253_v5 }
  0x76   : > { %p1140_p7 = pnand %p1139_p3, %p1133_p6 }
  0x79   : > { %287 = vadd.xlane.f32.xlu1 %v256_v6  ;;  %285 = vadd.xlane.f32.xlu0 %v254_v7 }
  0x7d   : > { %275 = vadd.xlane.f32.xlu1 %v1424_v8  ;;  %273 = vadd.xlane.f32.xlu0 %v1427_v9 }
  0x81   : > { %291 = vadd.xlane.f32.xlu1 %v1432_v10  ;;  %289 = vadd.xlane.f32.xlu0 %v1435_v11 }
  0x85   : > { %279 = vadd.xlane.f32.xlu1 %v1440_v12  ;;  %277 = vadd.xlane.f32.xlu0 %v1443_v13 }
  0x89   : > { %295 = vadd.xlane.f32.xlu1 %v1448_v14  ;;  %293 = vadd.xlane.f32.xlu0 %v1451_v15 }
  0xfa   : > { %v282_v16 = vpop.xlane.xlu1 %281  ;;  %v266_v17 = vpop.xlane.xlu0 %265 }
  0xfb   : > { %v297_v18 = vadd.f32 %v282_v16, %v266_v17 }
  0xfd   : > { %v305_v19 = vmul.f32 0.00390625, %v297_v18 }
  0xfe   : > { %v284_v20 = vpop.xlane.xlu1 %283  ;;  %v268_v21 = vpop.xlane.xlu0 %267 }
  0xff   : > { %v1455_v22 = vsub.f32 %v249_v1, %v305_v19  ;;  %v298_v23 = vadd.f32 %v284_v20, %v268_v21  ;;  %v1457_v24 = vsub.f32 %v250_v0, %v305_v19  ;;  %v1013_v0 = vld [vmem:[#allocation5] sm:$0xff]   ;;  %v1016_v21 = vld [vmem:[#allocation7 + $0x10] sm:$0xff]  }
 0x100   : > { %907 = vmatprep.subr.bf16.mxu0 %v1013_v0 }
 0x101   : > { %v306_v25 = vmul.f32 0.00390625, %v298_v23  ;;  %v329_v26 = vmul.f32 %v1455_v22, %v1455_v22  ;;  %v353_v31 = vmul.f32 %v1457_v24, %v1457_v24  ;;  %908 = vmatpush3.bf16.msra.mxu0 %v1013_v0  ;;  %v1017_v23 = vld [vmem:[#allocation5 + $0x10] sm:$0xff]  }
 0x102   : > { %v272_v27 = vpop.xlane.xlu1 %271  ;;  %v270_v28 = vpop.xlane.xlu0 %269 }
 0x103   : > { %v1461_v29 = vsub.f32 %v251_v3, %v306_v25  ;;  %337 = vadd.xlane.f32.xlu0 %v329_v26  ;;  %v1463_v30 = vsub.f32 %v252_v2, %v306_v25  ;;  %v1019_v25 = vld [vmem:[#allocation5 + $0x18] sm:$0xff]  }
 0x105   : > { %v330_v32 = vmul.f32 %v1461_v29, %v1461_v29  ;;  %v354_v39 = vmul.f32 %v1463_v30, %v1463_v30 }
 0x106   : > { %v288_v33 = vpop.xlane.xlu1 %287  ;;  %v286_v34 = vpop.xlane.xlu0 %285 }
 0x107   : > { %v300_v35 = vadd.f32 %v288_v33, %v272_v27  ;;  %v299_v36 = vadd.f32 %v286_v34, %v270_v28  ;;  %361 = vadd.xlane.f32.xlu0 %v353_v31  ;;  %339 = vadd.xlane.f32.xlu1 %v330_v32  ;;  %v1021_v27 = vld [vmem:[#allocation5 + $0x20] sm:$0xff]   ;;  %v1022_v28 = vld [vmem:[#allocation7 + $0x28] sm:$0xff]   ;;  %v1024_v32 = vld [vmem:[#allocation7 + $0x30] sm:$0xff]  }
 0x108   : > { %v1023_v31 = vld [vmem:[#allocation5 + $0x28] sm:$0xff]   ;;  %v1025_v33 = vld [vmem:[#allocation5 + $0x30] sm:$0xff]   ;;  %v1026_v34 = vld [vmem:[#allocation7 + $0x38] sm:$0xff]  }
 0x109   : > { %v308_v37 = vmul.f32 0.00390625, %v300_v35  ;;  %v307_v38 = vmul.f32 0.00390625, %v299_v36  ;;  %v1027_v35 = vld [vmem:[#allocation5 + $0x38] sm:$0xff]  }
 0x10a   : > { %v276_v40 = vpop.xlane.xlu1 %275  ;;  %v274_v41 = vpop.xlane.xlu0 %273 }
 0x10b   : > { %v1471_v42 = vsub.f32 %v255_v4, %v308_v37  ;;  %v1473_v43 = vsub.f32 %v253_v5, %v307_v38  ;;  %363 = vadd.xlane.f32.xlu1 %v354_v39  ;;  %v1475_v44 = vsub.f32 %v256_v6, %v308_v37  ;;  %v1481_v47 = vsub.f32 %v254_v7, %v307_v38 }
 0x10d   : > { %v332_v45 = vmul.f32 %v1471_v42, %v1471_v42  ;;  %v331_v46 = vmul.f32 %v1473_v43, %v1473_v43  ;;  %v356_v54 = vmul.f32 %v1475_v44, %v1475_v44  ;;  %v355_v57 = vmul.f32 %v1481_v47, %v1481_v47 }
 0x10e   : > { %v292_v48 = vpop.xlane.xlu1 %291  ;;  %v290_v49 = vpop.xlane.xlu0 %289 }
 0x10f   : > { %v302_v50 = vadd.f32 %v292_v48, %v276_v40  ;;  %v301_v51 = vadd.f32 %v290_v49, %v274_v41  ;;  %343 = vadd.xlane.f32.xlu1 %v332_v45  ;;  %341 = vadd.xlane.f32.xlu0 %v331_v46 }
 0x111   : > { %v310_v52 = vmul.f32 0.00390625, %v302_v50  ;;  %v309_v53 = vmul.f32 0.00390625, %v301_v51 }
 0x112   : > { %v280_v55 = vpop.xlane.xlu1 %279  ;;  %v278_v56 = vpop.xlane.xlu0 %277 }
 0x113   : > { %v1488_v58 = vsub.f32 %v1424_v8, %v310_v52  ;;  %v1491_v59 = vsub.f32 %v1427_v9, %v309_v53  ;;  %367 = vadd.xlane.f32.xlu1 %v356_v54  ;;  %365 = vadd.xlane.f32.xlu0 %v355_v57  ;;  %v1494_v60 = vsub.f32 %v1432_v10, %v310_v52  ;;  %v1014_v9 = vld [vmem:[#allocation7 + $0x8] sm:$0xff]  }
 0x114   : > { %v1501_v1 = vsub.f32 %v1435_v11, %v309_v53  ;;  %v1015_v10 = vld [vmem:[#allocation5 + $0x8] sm:$0xff]   ;;  %885 = vmatprep.subr.bf16.mxu1 %v1014_v9 }
 0x115   : > { %v334_v61 = vmul.f32 %v1488_v58, %v1488_v58  ;;  %v333_v62 = vmul.f32 %v1491_v59, %v1491_v59  ;;  %v358_v8 = vmul.f32 %v1494_v60, %v1494_v60  ;;  %909 = vmatprep.subr.bf16.mxu0 %v1015_v10  ;;  %886 = vmatpush3.bf16.msra.mxu1 %v1014_v9 }
 0x116   : > { %v296_v2 = vpop.xlane.xlu1 %295  ;;  %v294_v3 = vpop.xlane.xlu0 %293  ;;  %v357_v11 = vmul.f32 %v1501_v1, %v1501_v1  ;;  %910 = vmatpush3.bf16.msra.mxu0 %v1015_v10  ;;  %887 = vmatprep.subr.bf16.mxu1 %v1016_v21 }
 0x117   : > { %v304_v4 = vadd.f32 %v296_v2, %v280_v55  ;;  %v303_v5 = vadd.f32 %v294_v3, %v278_v56  ;;  %347 = vadd.xlane.f32.xlu1 %v334_v61  ;;  %345 = vadd.xlane.f32.xlu0 %v333_v62 }
 0x118   : > { %911 = vmatprep.subr.bf16.mxu0 %v1017_v23 }
 0x119   : > { %v312_v6 = vmul.f32 0.00390625, %v304_v4  ;;  %v311_v7 = vmul.f32 0.00390625, %v303_v5  ;;  %888 = vmatpush3.bf16.msra.mxu1 %v1016_v21 }
 0x11a   : > { %912 = vmatpush3.bf16.msra.mxu0 %v1017_v23 }
 0x11b   : > { %v1508_v16 = vsub.f32 %v1440_v12, %v312_v6  ;;  %v1511_v17 = vsub.f32 %v1443_v13, %v311_v7  ;;  %371 = vadd.xlane.f32.xlu1 %v358_v8  ;;  %369 = vadd.xlane.f32.xlu0 %v357_v11  ;;  %v1514_v18 = vsub.f32 %v1448_v14, %v312_v6  ;;  %v1018_v14 = vld [vmem:[#allocation7 + $0x18] sm:$0xff]  }
 0x11c   : > { %v1521_v12 = vsub.f32 %v1451_v15, %v311_v7  ;;  %889 = vmatprep.subr.bf16.mxu1 %v1018_v14  ;;  %913 = vmatprep.subr.bf16.mxu0 %v1019_v25  ;;  %v1020_v15 = vld [vmem:[#allocation7 + $0x20] sm:$0xff]  }
 0x11d   : > { %v336_v19 = vmul.f32 %v1508_v16, %v1508_v16  ;;  %v335_v20 = vmul.f32 %v1511_v17, %v1511_v17  ;;  %v360_v13 = vmul.f32 %v1514_v18, %v1514_v18  ;;  %890 = vmatpush3.bf16.msra.mxu1 %v1018_v14 }
 0x11e   : > { %v359_v26 = vmul.f32 %v1521_v12, %v1521_v12  ;;  %914 = vmatpush3.bf16.msra.mxu0 %v1019_v25  ;;  %891 = vmatprep.subr.bf16.mxu1 %v1020_v15 }
 0x11f   : > { %351 = vadd.xlane.f32.xlu1 %v336_v19  ;;  %349 = vadd.xlane.f32.xlu0 %v335_v20 }
 0x120   : > { %915 = vmatprep.subr.bf16.mxu0 %v1021_v27 }
 0x121   : > { %892 = vmatpush3.bf16.msra.mxu1 %v1020_v15 }
 0x122   : > { %916 = vmatpush3.bf16.msra.mxu0 %v1021_v27  ;;  %893 = vmatprep.subr.bf16.mxu1 %v1022_v28 }
 0x123   : > { %375 = vadd.xlane.f32.xlu1 %v360_v13  ;;  %373 = vadd.xlane.f32.xlu0 %v359_v26 }
 0x124   : > { %917 = vmatprep.subr.bf16.mxu0 %v1023_v31 }
 0x125   : > { %894 = vmatpush3.bf16.msra.mxu1 %v1022_v28 }
 0x126   : > { %918 = vmatpush3.bf16.msra.mxu0 %v1023_v31  ;;  %895 = vmatprep.subr.bf16.mxu1 %v1024_v32 }
 0x127   : > { %919 = vmatprep.subr.bf16.mxu0 %v1025_v33 }
 0x129   : > { %896 = vmatpush3.bf16.msra.mxu1 %v1024_v32 }
 0x12a   : > { %920 = vmatpush3.bf16.msra.mxu0 %v1025_v33  ;;  %897 = vmatprep.subr.bf16.mxu1 %v1026_v34 }
 0x12b   : > { %921 = vmatprep.subr.bf16.mxu0 %v1027_v35 }
 0x12d   : > { %898 = vmatpush3.bf16.msra.mxu1 %v1026_v34 }
 0x12e   : > { %922 = vmatpush3.bf16.msra.mxu0 %v1027_v35 }
 0x190   : > { %v338_v36 = vpop.xlane.xlu0 %337 }
 0x194   : > { %v340_v37 = vpop.xlane.xlu1 %339  ;;  %v362_v38 = vpop.xlane.xlu0 %361 }
 0x195   : > { %v377_v39 = vadd.f32 %v362_v38, %v338_v36 }
 0x197   : > { %v385_v40 = vmul.f32 0.00390625, %v377_v39 }
 0x198   : > { %v364_v41 = vpop.xlane.xlu1 %363 }
 0x199   : > { %v393_v45 = vadd.f32 1e-05, %v385_v40  ;;  %v378_v46 = vadd.f32 %v364_v41, %v340_v37 }
 0x19b   : > { %v386_v48 = vmul.f32 0.00390625, %v378_v46  ;;  %1028 = vrsqrt.f32 %v393_v45 }
 0x19c   : > { %v344_v49 = vpop.xlane.xlu1 %343  ;;  %v342_v50 = vpop.xlane.xlu0 %341 }
 0x19d   : > { %v394_v51 = vadd.f32 1e-05, %v386_v48 }
 0x19f   : > { %1030 = vrsqrt.f32 %v394_v51 }
 0x1a0   : > { %v368_v52 = vpop.xlane.xlu1 %367  ;;  %v366_v54 = vpop.xlane.xlu0 %365 }
 0x1a1   : > { %v380_v53 = vadd.f32 %v368_v52, %v344_v49  ;;  %v379_v55 = vadd.f32 %v366_v54, %v342_v50  ;;  %v850_v54 = vld [vmem:[%s1599_s3] ss:$0 sm:$0xff] }
 0x1a3   : > { %v388_v56 = vmul.f32 0.00390625, %v380_v53  ;;  %v387_v57 = vmul.f32 0.00390625, %v379_v55 }
 0x1a4   : > { %v348_v61 = vpop.xlane.xlu1 %347  ;;  %v346_v63 = vpop.xlane.xlu0 %345 }
 0x1a5   : > { %v396_v62 = vadd.f32 1e-05, %v388_v56  ;;  %v1029_v0 = vpop.eup %1028  ;;  %v395_v2 = vadd.f32 1e-05, %v387_v57 }
 0x1a6   : > { %v421_v7 = vmul.f32 %v1029_v0, %v1457_v24  ;;  %v409_v10 = vmul.f32 %v1029_v0, %v1455_v22 }
 0x1a7   : > { %1032 = vrsqrt.f32 %v396_v62 }
 0x1a8   : > { %1034 = vrsqrt.f32 %v395_v2  ;;  %v372_v3 = vpop.xlane.xlu1 %371  ;;  %v370_v6 = vpop.xlane.xlu0 %369 }
 0x1a9   : > { %v1031_v4 = vpop.eup %1030  ;;  %v382_v5 = vadd.f32 %v372_v3, %v348_v61  ;;  %v381_v8 = vadd.f32 %v370_v6, %v346_v63 }
 0x1aa   : > { %v422_v9 = vmul.f32 %v1031_v4, %v1463_v30  ;;  %v410_v11 = vmul.f32 %v1031_v4, %v1461_v29 }
 0x1ab   : > { %v390_v19 = vmul.f32 0.00390625, %v382_v5  ;;  %v389_v20 = vmul.f32 0.00390625, %v381_v8 }
 0x1ac   : > { %v352_v21 = vpop.xlane.xlu1 %351  ;;  %v429_v23 = vpack.c.bf16 %v422_v9, %v421_v7  ;;  %v417_v13 = vpack.c.bf16 %v410_v11, %v409_v10  ;;  %v350_v25 = vpop.xlane.xlu0 %349 }
 0x1ad   : > { %v398_v14 = vadd.f32 1e-05, %v390_v19  ;;  %v397_v26 = vadd.f32 1e-05, %v389_v20 }
 0x1ae   : > { %899 = vmatprep.mubr.bf16.mxu1 %v429_v23  ;;  %923 = vmatprep.mubr.bf16.mxu0 %v417_v13 }
 0x1af   : > { %1036 = vrsqrt.f32 %v398_v14 }
 0x1b0   : > { %1038 = vrsqrt.f32 %v397_v26  ;;  %v376_v24 = vpop.xlane.xlu1 %375  ;;  %v374_v30 = vpop.xlane.xlu0 %373 }
 0x1b1   : > { %v1033_v15 = vpop.eup %1032  ;;  %v384_v27 = vadd.f32 %v376_v24, %v352_v21  ;;  %v383_v22 = vadd.f32 %v374_v30, %v350_v25 }
 0x1b2   : > { %v1035_v28 = vpop.eup %1034  ;;  %v424_v29 = vmul.f32 %v1033_v15, %v1475_v44  ;;  %v412_v31 = vmul.f32 %v1033_v15, %v1471_v42 }
 0x1b3   : > { %v392_v32 = vmul.f32 0.00390625, %v384_v27  ;;  %v423_v33 = vmul.f32 %v1035_v28, %v1481_v47  ;;  %v411_v34 = vmul.f32 %v1035_v28, %v1473_v43  ;;  %v391_v35 = vmul.f32 0.00390625, %v383_v22 }
 0x1b5   : > { %v400_v36 = vadd.f32 1e-05, %v392_v32  ;;  %v430_v37 = vpack.c.bf16 %v424_v29, %v423_v33  ;;  %v418_v38 = vpack.c.bf16 %v412_v31, %v411_v34  ;;  %v399_v39 = vadd.f32 1e-05, %v391_v35 }
 0x1b7   : > { %1040 = vrsqrt.f32 %v400_v36  ;;  %900 = vmatmul.mubr.bf16.vlgmr.msra.gmra.mrb[0].mxu1 %v430_v37  ;;  %924 = vmatmul.mubr.bf16.vlgmr.msra.gmra.mrb[0].mxu0 %v418_v38 }
 0x1b8   : > { %1042 = vrsqrt.f32 %v399_v39 }
 0x1b9   : > { %v1037_v40 = vpop.eup %1036 }
 0x1ba   : > { %v1039_v41 = vpop.eup %1038  ;;  %v426_v44 = vmul.f32 %v1037_v40, %v1494_v60  ;;  %v414_v42 = vmul.f32 %v1037_v40, %v1488_v58 }
 0x1bb   : > { %v425_v45 = vmul.f32 %v1039_v41, %v1501_v1  ;;  %v413_v43 = vmul.f32 %v1039_v41, %v1491_v59 }
 0x1bd   : > { %v431_v47 = vpack.c.bf16 %v426_v44, %v425_v45  ;;  %v419_v46 = vpack.c.bf16 %v414_v42, %v413_v43 }
 0x1bf   : > { %903 = vmatprep.mubr.bf16.mxu1 %v431_v47  ;;  %927 = vmatprep.mubr.bf16.mxu0 %v419_v46 }
 0x1c1   : > { %v1041_v48 = vpop.eup %1040 }
 0x1c2   : > { %v1043_v49 = vpop.eup %1042  ;;  %v428_v50 = vmul.f32 %v1041_v48, %v1514_v18  ;;  %v416_v51 = vmul.f32 %v1041_v48, %v1508_v16 }
 0x1c3   : > { %v427_v52 = vmul.f32 %v1043_v49, %v1521_v12  ;;  %v415_v60 = vmul.f32 %v1043_v49, %v1511_v17 }
 0x1c5   : > { %v432_v58 = vpack.c.bf16 %v428_v50, %v427_v52  ;;  %v420_v53 = vpack.c.bf16 %v416_v51, %v415_v60 }
 0x1c7   : > { %904 = vmatmul.mubr.bf16.gmra.mrb[4].mxu1 %v432_v58  ;;  %928 = vmatmul.mubr.bf16.gmra.mrb[4].mxu0 %v420_v53 }
 0x28a   : > { %v901_v59 = vpop.f32.mrb[0].mxu1  ;;  %v925_v1 = vpop.f32.mrb[0].mxu0 }
 0x28b   : > { %v669_v55 = vadd.f32 %v925_v1, %v901_v59  ;;  %v547_v56 = vpop.f32.mrb[1].mxu1  ;;  %v660_v18 = vpop.f32.mrb[1].mxu0 }
 0x28c   : > { %v661_v57 = vadd.f32 %v660_v18, %v547_v56  ;;  %v902_v16 = vpop.f32.mrb[2].mxu1  ;;  %v926_v61 = vpop.f32.mrb[2].mxu0 }
 0x28d   : > { %v700_v12 = vadd.f32 %v850_v54, %v669_v55  ;;  %v672_v62 = vadd.f32 %v926_v61, %v902_v16  ;;  %v550_v17 = vpop.f32.mrb[3].mxu1  ;;  %v663_v63 = vpop.f32.mrb[3].mxu0 }
 0x28e   : > { %v698_v0 = vadd.f32 %v850_v54, %v661_v57  ;;  %v664_v2 = vadd.f32 %v663_v63, %v550_v17 }
 0x28f   : > { %708 = vst [vmem:[%s245_s30 + $0x10] sm:$0xff] %v700_v12  ;;  %v701_v3 = vadd.f32 %v850_v54, %v672_v62 }
 0x290   : > { %706 = vst [vmem:[%s245_s30] sm:$0xff] %v698_v0  ;;  %v699_v4 = vadd.f32 %v850_v54, %v664_v2 }
 0x291   : > { %709 = vst [vmem:[%s245_s30 + $0x18] sm:$0xff] %v701_v3 }
 0x292   : > { %707 = vst [vmem:[%s245_s30 + $0x8] sm:$0xff] %v699_v4 }
 0x29a   : > { %v905_v5 = vpop.f32.mrb[4].mxu1  ;;  %v929_v6 = vpop.f32.mrb[4].mxu0 }
 0x29b   : > { %v685_v7 = vadd.f32 %v929_v6, %v905_v5  ;;  %v563_v8 = vpop.f32.mrb[5].mxu1  ;;  %v676_v9 = vpop.f32.mrb[5].mxu0 }
 0x29c   : > { %v677_v10 = vadd.f32 %v676_v9, %v563_v8  ;;  %v906_v11 = vpop.f32.mrb[6].mxu1  ;;  %v930_v19 = vpop.f32.mrb[6].mxu0 }
 0x29d   : > { %v704_v20 = vadd.f32 %v850_v54, %v685_v7  ;;  %v688_v21 = vadd.f32 %v930_v19, %v906_v11  ;;  %v566_v23 = vpop.f32.mrb[7].mxu1  ;;  %v679_v13 = vpop.f32.mrb[7].mxu0 }
 0x29e   : > { %v702_v14 = vadd.f32 %v850_v54, %v677_v10  ;;  %v680_v25 = vadd.f32 %v679_v13, %v566_v23 }
 0x29f   : > { %712 = vst [vmem:[%s245_s30 + $0x30] sm:$0xff] %v704_v20  ;;  %v705_v26 = vadd.f32 %v850_v54, %v688_v21 }
 0x2a0   : > { %710 = vst [vmem:[%s245_s30 + $0x20] sm:$0xff] %v702_v14  ;;  %v703_v24 = vadd.f32 %v850_v54, %v680_v25 }
 0x2a1   : > { %713 = vst [vmem:[%s245_s30 + $0x38] sm:$0xff] %v705_v26 }
 0x2a2   : > { %711 = vst [vmem:[%s245_s30 + $0x28] sm:$0xff] %v703_v24 }
 0x2a3   : > { %1143 = shalt.err (!%p1140_p7)
}
 0x2a4   : > { %s1144_s8 = scalar_lea.hbm %s1553_s28, 1024  ;;  %s1148_s21 = scalar_lea.hbm %s1600_s4, 4096 }
 0x2a5   : > { %p1145_p9 = scmp.ne.s32.totalorder %s1553_s28, %s1144_s8  ;;  %p1149_p5 = scmp.lt.u32.totalorder %s1553_s28, %s1600_s4 }
 0x2a6   : > { %p1150_p10 = scmp.lt.u32.totalorder %s1148_s21, %s1144_s8  ;;  %p1152_p1 = scmp.lt.u32.totalorder %s1144_s8, %s1553_s28 }
 0x2a7   : > { %p1146_p12 = pnand %p1145_p9, %p1349_p4 }
 0x2a8   : > { %p1151_p11 = por %p1150_p10, %p1149_p5 }
 0x2a9   : > { %p1147_p0 = pneg %p1146_p12 }
 0x2aa   : > { %p1153_p2 = por %p1152_p1, %p1151_p11 }
 0x2ac   : > { %p1154_p6 = pnand %p1153_p2, %p1147_p0 }
 0x2ae   : > { %1157 = shalt.err (!%p1154_p6)
}
 0x2af   : > { %s1210_s30 = smov 128   ;;  %s1211_s6 = smov 8  }
 0x2b0   : > { %949 = dma.vmem_to_hbm [thread:$0]  (%p1349_p4), %s1548_s5, 1024, %s1553_s28, %s715_s19, %s1210_s30, %s1210_s30, %s1211_s6  }
 0x2b1 PF: > { %p971_p8 = scmp.ge.s32.totalorder %s1200_s18, 2  ;;  %s743_s24 = sand.u32 1, %s1188_s15  }
 0x2b2   : > { %p1615_p13 = scmp.ne.s32.totalorder %s1605_s22, 0  ;;  %s744_s20 = scalar_lea.sflag [#allocation4], %s743_s24 }
 0x2b4   : > { %p963_p3 = pnand %p971_p8, %p1615_p13 }
 0x2b6   : > { %1183 = dma.done.wait (!%p963_p3), %s744_s20, 1024  }
 0x2b7   : > { %1185 = vsyncadd (!%p963_p3), %s744_s20, 4294966272  ;;  %p18_p7 = scmp.ge.s32.totalorder %s1339_s9, 6   ;;  %s1616_s15 = smov %s1192_s16 }
 0x2b8   : > { %s1617_s16 = smov %s1196_s17  ;;  %s1618_s17 = smov %s1355_s14 }
 0x2b9   : > { %s1619_s18 = smov %s1339_s9  ;;  %20 = sbr.rel (!%p18_p7) target bundleno = 6 (0x6), region = 89 }
 0x2c0   :  { %749 = vsyncpa [#allocation3], 1 }
 0x2c1   :  { %751 = vsyncpa [#allocation3 + $0x1], 1 }
 0x2c2   :  { %752 = vsyncpa [#allocation6], 1 }
 0x2c3   :  { %753 = vsyncpa [#allocation4], 1 }
 0x2c4   :  { %755 = vsyncpa [#allocation4 + $0x1], 1 }

</bundles_post_ra>
